<compile_context>
chip_gen: v7x
topology: tpu7x:2x2x1
jax: 0.10.0
libtpu: 0.0.40
codegen_flags: <defaults>
</compile_context>

<pallas_src>
import math

import jax
import jax.numpy as jnp
from jax import lax
from jax.experimental import pallas as pl
from jax.experimental.pallas import tpu as pltpu


_LANE = 128
_SUBLANE = 8
_CHUNK = 8          # S-chunk (sublanes) of the fused in-kernel accumulation loop
_MAX_TS = 512       # max sequence tile per grid step before S-axis tiling kicks in
_MAX_TB = 512       # max batch tile
_MIB = 1024 * 1024


def _round_up(n, m):
    return ((n + m - 1) // m) * m


def _cdiv(a, b):
    return -(-a // b)


def _vmem_params():
    """(footprint budget, vmem_limit_bytes) derived from the chip's physical VMEM."""
    try:
        cap = int(pltpu.get_tpu_info().vmem_capacity_bytes)
    except Exception:
        cap = 64 * _MIB                      # conservative fallback (v7x per-core VMEM)
    budget = min(max(int(cap * 0.55), 24 * _MIB), 96 * _MIB)
    limit = min(max(int(cap * 0.85), 40 * _MIB), 120 * _MIB)
    return budget, limit


def _choose_tiles(batch, seq, d_pad, x_itemsize, out_itemsize, vmem_budget):
    """Pick (batch tile, sequence tile) from a footprint model of the real VMEM use."""
    seq8 = _round_up(seq, _SUBLANE)

    def tb_for(ts):
        # Double-buffered w_eff tile + bias/gauss rows + scale/shift rows.
        fixed = 2 * ts * d_pad * x_itemsize
        fixed += 2 * 2 * _round_up(ts // _SUBLANE, _SUBLANE) * _LANE * 4
        fixed += 2 * 2 * _SUBLANE * d_pad * 4
        per_tb = (2 * ts * d_pad * x_itemsize          # x tiles (double-buffered)
                  + 2 * d_pad * out_itemsize           # out tiles
                  + d_pad * 4 + 2 * _LANE * 4          # f32 accumulator scratch
                  + 3 * _CHUNK * d_pad * 4)            # chunk-sized f32 temporaries
        avail = vmem_budget - fixed
        return 0 if avail <= 0 else avail // per_tb

    # Sequence tile: whole (8-padded) sequence when small, else lane-aligned tiles.
    if seq8 <= _MAX_TS:
        ts = seq8
    else:
        ts = _round_up(_cdiv(seq8, _cdiv(seq8, _MAX_TS)), _LANE)
    # Shrink the S tile (keeping it lane-aligned) until a sublane group of batch fits.
    while tb_for(ts) < _SUBLANE and ts > _LANE:
        ts = _round_up(max(_LANE, ts // 2), _LANE)

    tb = int(min(tb_for(ts), _MAX_TB))
    tb = max(_SUBLANE, (tb // _SUBLANE) * _SUBLANE)

    if batch <= tb and batch < 2 * _SUBLANE:
        tb = batch                                     # tiny batch: one full tile
    else:
        # >=2 batch tiles so the "parallel" axis can shard across v7x's two cores
        # and DMA/compute overlap has work to hide.
        tb = min(tb, max(_SUBLANE, _round_up(_cdiv(batch, 2), _SUBLANE)))
    return tb, ts


def _make_kernel(chunk, n_chunks, unroll, compute_dtype):
    def kernel(x_ref, w_ref, bias_ref, gauss_ref, scale_ref, shift_ref,
               o_ref, acc_a, acc_t, acc_g):
        s_idx = pl.program_id(1)

        @pl.when(s_idx == 0)
        def _init():
            acc_a[...] = jnp.zeros_like(acc_a)
            acc_t[...] = jnp.zeros_like(acc_t)
            acc_g[...] = jnp.zeros_like(acc_g)

        tb, _, dp = x_ref.shape

        def body(c, carry):
            a, t, g = carry
            start = pl.multiple_of(c * chunk, chunk)
            xch = x_ref[:, pl.ds(start, chunk), :].astype(compute_dtype)   # (TB,CH,Dp)
            wch = w_ref[pl.ds(start, chunk), :].astype(compute_dtype)      # (CH,Dp)
            bch = bias_ref[pl.ds(c, 1), :]                                 # (1,CH) f32
            gch = gauss_ref[pl.ds(c, 1), :]                                # (1,CH) f32

            # score[b, s] = tanh(x . w_eff + bias_eff): lane reduce over Dp (XLU),
            # tanh on the EUP; f32 accumulation regardless of compute dtype.
            logits = jnp.sum(xch * wch[None, :, :], axis=-1,
                             dtype=jnp.float32)                            # (TB,CH)
            scores = jnp.tanh(logits + bch)                                # (TB,CH)

            sc = scores.astype(compute_dtype)
            a = a + jnp.sum(sc[:, :, None] * xch, axis=1,
                            dtype=jnp.float32)                             # (TB,Dp)
            t = t + jnp.sum(scores, axis=1, keepdims=True)                 # (TB,1)
            g = g + jnp.sum(scores * gch, axis=1, keepdims=True)           # (TB,1)
            return a, t, g

        init = (jnp.zeros((tb, dp), jnp.float32),
                jnp.zeros((tb, 1), jnp.float32),
                jnp.zeros((tb, 1), jnp.float32))
        pa, pt, pg = lax.fori_loop(0, n_chunks, body, init, unroll=unroll)
        acc_a[...] += pa
        acc_t[...] += pt
        acc_g[...] += pg

        @pl.when(s_idx == pl.num_programs(1) - 1)
        def _finalize():
            scale = scale_ref[...]                       # (1,Dp) f32
            shift = shift_ref[...]                       # (1,Dp) f32
            out = scale * acc_a[...] + shift * acc_t[...] + acc_g[...]
            o_ref[...] = out.astype(o_ref.dtype)         # lane-dense unmasked store

    return kernel


def gaussian_attention(x, atten_w, atten_bias, *,
                       bn_gamma=None, bn_beta=None, bn_mean=None, bn_var=None,
                       bn_eps=1e-5, sigma=5.0, mu=None, interpret=False):
    """x: (B, S, D); atten_w: (S, D, 1); atten_bias: (S, 1, 1) -> (B, D)."""
    B, S, D = x.shape
    f32 = jnp.float32
    mu = float(S // 2) if mu is None else float(mu)

    # Eval-mode BatchNorm1d affine (defaults == fresh running stats => ~identity).
    # TODO(synk): training-mode BatchNorm1d batch statistics need a pre-pass; left to XLA.
    gamma = jnp.ones((D,), f32) if bn_gamma is None else bn_gamma.astype(f32)
    beta = jnp.zeros((D,), f32) if bn_beta is None else bn_beta.astype(f32)
    mean = jnp.zeros((D,), f32) if bn_mean is None else bn_mean.astype(f32)
    var = jnp.ones((D,), f32) if bn_var is None else bn_var.astype(f32)
    scale = gamma * lax.rsqrt(var + bn_eps)                                 # (D,)
    shift = beta - mean * scale                                             # (D,)

    # Gaussian positional weight (per position, repeated over D in the torch code).
    pos = jnp.arange(S, dtype=f32)
    gauss = (1.0 / (math.sqrt(2.0 * math.pi) * sigma)
             * jnp.exp(-0.5 * ((pos - mu) / sigma) ** 2))                   # (S,)

    w = atten_w[..., 0].astype(f32)                                         # (S, D)
    b = atten_bias[:, 0, 0].astype(f32)                                     # (S,)
    w_eff = w * scale[None, :]                                              # (S, D)
    bias_eff = b + w @ shift + gauss * jnp.sum(w, axis=1)                   # (S,)

    Dp = _round_up(D, _LANE)
    x_isz = jnp.dtype(x.dtype).itemsize
    budget, vmem_limit = _vmem_params()
    TB, TS = _choose_tiles(B, S, Dp, x_isz, x_isz, budget)
    Sp = _round_up(S, TS)
    Bp = _round_up(B, TB)

    # v6e/v7x VALUs are bf16-native: keep bf16 multiplies, accumulate in f32.
    compute_dtype = jnp.bfloat16 if x.dtype == jnp.bfloat16 else jnp.float32

    x_p = jnp.pad(x, ((0, Bp - B), (0, Sp - S), (0, Dp - D)))
    w_p = jnp.pad(w_eff.astype(compute_dtype), ((0, Sp - S), (0, Dp - D)))
    # bias/gauss laid out (Sp//8, 8): chunk c of an S tile is one sublane row,
    # so the kernel only ever does dynamic sublane-dim slicing.
    bias_p = jnp.pad(bias_eff, (0, Sp - S)).reshape(Sp // _CHUNK, _CHUNK)
    gauss_p = jnp.pad(gauss, (0, Sp - S)).reshape(Sp // _CHUNK, _CHUNK)
    scale_p = jnp.pad(scale, (0, Dp - D))[None, :]                          # (1, Dp)
    shift_p = jnp.pad(shift, (0, Dp - D))[None, :]                          # (1, Dp)

    chunk = _CHUNK
    n_chunks = TS // chunk
    unroll = True if n_chunks <= 16 else 4

    kernel = _make_kernel(chunk, n_chunks, unroll, compute_dtype)
    grid = (Bp // TB, Sp // TS)

    out = pl.pallas_call(
        kernel,
        out_shape=jax.ShapeDtypeStruct((Bp, Dp), x.dtype),
        grid=grid,
        in_specs=[
            pl.BlockSpec((TB, TS, Dp), lambda bi, si: (bi, si, 0)),      # x (pipelined)
            pl.BlockSpec((TS, Dp), lambda bi, si: (si, 0)),              # w_eff
            pl.BlockSpec((TS // _CHUNK, _CHUNK), lambda bi, si: (si, 0)),  # bias_eff rows
            pl.BlockSpec((TS // _CHUNK, _CHUNK), lambda bi, si: (si, 0)),  # gauss rows
            pl.BlockSpec((1, Dp), lambda bi, si: (0, 0)),                # bn scale (resident)
            pl.BlockSpec((1, Dp), lambda bi, si: (0, 0)),                # bn shift (resident)
        ],
        out_specs=pl.BlockSpec((TB, Dp), lambda bi, si: (bi, 0)),
        scratch_shapes=[
            pltpu.VMEM((TB, Dp), jnp.float32),   # A = sum_s score * x
            pltpu.VMEM((TB, 1), jnp.float32),    # T = sum_s score
            pltpu.VMEM((TB, 1), jnp.float32),    # G = sum_s score * gauss
        ],
        compiler_params=pltpu.CompilerParams(
            dimension_semantics=("parallel", "arbitrary"),
            vmem_limit_bytes=vmem_limit,
        ),
        interpret=interpret,
    )(x_p, w_p, bias_p, gauss_p, scale_p, shift_p)

    return out[:B, :D]


def init_params(key, input_size, seq_len):
    """Glorot-style init matching the PyTorch GaussianAttention parameters."""
    stdv = math.sqrt(6.0 / (input_size + 1))
    atten_w = jax.random.uniform(
        key, (seq_len, input_size, 1), dtype=jnp.float32, minval=-stdv, maxval=stdv)
    atten_bias = jnp.zeros((seq_len, 1, 1), dtype=jnp.float32)
    return atten_w, atten_bias


def reference(x, atten_w, atten_bias, *, sigma=5.0, bn_eps=1e-5):
    """Pure-JAX mirror of GaussianAttention.forward (eval-mode BatchNorm1d)."""
    _, S, D = x.shape
    mu = float(S // 2)
    pos = jnp.arange(S, dtype=jnp.float32)[:, None]
    gw = (1.0 / (math.sqrt(2.0 * math.pi) * sigma)
          * jnp.exp(-0.5 * ((pos - mu) / sigma) ** 2))                      # (S, 1)
    gw = jnp.tile(gw, (1, D))                                               # (S, D)
    xb = x.astype(jnp.float32) / jnp.sqrt(1.0 + bn_eps)                     # BN, fresh stats
    xb = xb + gw[None, :, :]
    it = jnp.transpose(xb, (1, 0, 2))                                       # (S, B, D)
    it = jnp.matmul(it, atten_w.astype(jnp.float32),
                    precision="highest") + atten_bias.astype(jnp.float32)   # (S, B, 1)
    it = jnp.transpose(it, (1, 0, 2))                                       # (B, S, 1)
    aw = jnp.tanh(it)
    ws = jnp.matmul(jnp.transpose(aw, (0, 2, 1)), xb, precision="highest")  # (B, 1, D)
    return ws[:, 0, :]


if __name__ == "__main__":
    key = jax.random.PRNGKey(0)
    k1, k2, k3, k4 = jax.random.split(key, 4)

    # Small case (MetricModel attn_layer scaled down): batch=2, seq=8, hidden=32.
    B, S, D = 2, 8, 32
    x = jax.random.normal(k1, (B, S, D), dtype=jnp.float32)
    atten_w, atten_bias = init_params(k2, input_size=D, seq_len=S)
    out = jax.block_until_ready(gaussian_attention(x, atten_w, atten_bias))
    ref = reference(x, atten_w, atten_bias)
    assert out.shape == (B, D)
    assert jnp.allclose(out, ref, atol=1e-4, rtol=1e-4), \
        float(jnp.max(jnp.abs(out - ref)))

    # Larger case: 2 batch tiles (megacore) + multi-chunk S accumulation loop.
    B2, S2, D2 = 16, 128, 256
    x2 = jax.random.normal(k3, (B2, S2, D2), dtype=jnp.float32)
    w2, b2 = init_params(k4, input_size=D2, seq_len=S2)
    out2 = jax.block_until_ready(gaussian_attention(x2, w2, b2))
    ref2 = reference(x2, w2, b2)
    assert out2.shape == (B2, D2)
    assert jnp.allclose(out2, ref2, atol=1e-3, rtol=1e-3), \
        float(jnp.max(jnp.abs(out2 - ref2)))

    print("KERNEL_OK")
</pallas_src>

<mosaic_0001>
module attributes {stable_mosaic.version = 11 : i64} {
  func.func @kernel(%arg0: i32, %arg1: i32, %arg2: memref<2x8x128xf32, #tpu.memory_space<vmem>>, %arg3: memref<8x128xf32, #tpu.memory_space<vmem>>, %arg4: memref<1x8xf32, #tpu.memory_space<vmem>>, %arg5: memref<1x8xf32, #tpu.memory_space<vmem>>, %arg6: memref<1x128xf32, #tpu.memory_space<vmem>>, %arg7: memref<1x128xf32, #tpu.memory_space<vmem>>, %arg8: memref<2x128xf32, #tpu.memory_space<vmem>>, %arg9: memref<2x128xf32, #tpu.memory_space<vmem>>, %arg10: memref<2x1xf32, #tpu.memory_space<vmem>>, %arg11: memref<2x1xf32, #tpu.memory_space<vmem>>) attributes {dimension_semantics = [#tpu.dimension_semantics<parallel>, #tpu.dimension_semantics<arbitrary>], iteration_bounds = array<i64: 1, 1>, scalar_prefetch = 0 : i64, scratch_operands = 3 : i64, tpu.core_type = #tpu.core_type<tc>, window_params = [{transform_indices = @transform_0, window_bounds = array<i64: 2, 8, 128>}, {transform_indices = @transform_1, window_bounds = array<i64: 8, 128>}, {transform_indices = @transform_2, window_bounds = array<i64: 1, 8>}, {transform_indices = @transform_3, window_bounds = array<i64: 1, 8>}, {pipeline_mode = #tpu.pipeline_mode<synchronous>, transform_indices = @transform_4, window_bounds = array<i64: 1, 128>}, {pipeline_mode = #tpu.pipeline_mode<synchronous>, transform_indices = @transform_5, window_bounds = array<i64: 1, 128>}, {transform_indices = @transform_6, window_bounds = array<i64: 2, 128>}]} {
    %c0_i32 = arith.constant 0 : i32
    %0 = arith.cmpi eq, %arg1, %c0_i32 : i32
    %1 = arith.extui %0 : i1 to i32
    %c0_i32_0 = arith.constant 0 : i32
    %2 = arith.cmpi ne, %1, %c0_i32_0 : i32
    scf.if %2 {
      %cst_26 = arith.constant 0.000000e+00 : f32
      %48 = vector.broadcast %cst_26 : f32 to vector<2x128xf32>
      %c0_27 = arith.constant 0 : index
      %c0_28 = arith.constant 0 : index
      %49 = vector.load %arg9[%c0_27, %c0_28] : memref<2x128xf32, #tpu.memory_space<vmem>>, vector<2x128xf32>
      tpu.vector_store %arg9[%c0_27, %c0_28], %48 {strides = array<i32>} : memref<2x128xf32, #tpu.memory_space<vmem>>, vector<2x128xf32>,
      %cst_29 = arith.constant 0.000000e+00 : f32
      %50 = vector.broadcast %cst_29 : f32 to vector<2x1xf32>
      %c0_30 = arith.constant 0 : index
      %c0_31 = arith.constant 0 : index
      %51 = vector.load %arg10[%c0_30, %c0_31] : memref<2x1xf32, #tpu.memory_space<vmem>>, vector<2x1xf32>
      tpu.vector_store %arg10[%c0_30, %c0_31], %50 {strides = array<i32>} : memref<2x1xf32, #tpu.memory_space<vmem>>, vector<2x1xf32>,
      %cst_32 = arith.constant 0.000000e+00 : f32
      %52 = vector.broadcast %cst_32 : f32 to vector<2x1xf32>
      %c0_33 = arith.constant 0 : index
      %c0_34 = arith.constant 0 : index
      %53 = vector.load %arg11[%c0_33, %c0_34] : memref<2x1xf32, #tpu.memory_space<vmem>>, vector<2x1xf32>
      tpu.vector_store %arg11[%c0_33, %c0_34], %52 {strides = array<i32>} : memref<2x1xf32, #tpu.memory_space<vmem>>, vector<2x1xf32>,
    } else {
    }
    %cst = arith.constant 0.000000e+00 : f32
    %3 = vector.broadcast %cst : f32 to vector<2x128xf32>
    %cst_1 = arith.constant 0.000000e+00 : f32
    %4 = vector.broadcast %cst_1 : f32 to vector<2x1xf32>
    %cst_2 = arith.constant 0.000000e+00 : f32
    %5 = vector.broadcast %cst_2 : f32 to vector<2x1xf32>
    %c0_i32_3 = arith.constant 0 : i32
    %c8_i32 = arith.constant 8 : i32
    %6 = arith.muli %c0_i32_3, %c8_i32 : i32
    %7 = tpu.assume_multiple %6, 8 : i32
    %c0 = arith.constant 0 : index
    %8 = arith.index_cast %7 : i32 to index
    %c0_4 = arith.constant 0 : index
    %9 = vector.load %arg2[%c0, %8, %c0_4] : memref<2x8x128xf32, #tpu.memory_space<vmem>>, vector<2x8x128xf32>
    %10 = arith.index_cast %7 : i32 to index
    %c0_5 = arith.constant 0 : index
    %11 = vector.load %arg3[%10, %c0_5] : memref<8x128xf32, #tpu.memory_space<vmem>>, vector<8x128xf32>
    %12 = arith.index_cast %c0_i32_3 : i32 to index
    %c0_6 = arith.constant 0 : index
    %13 = vector.load %arg4[%12, %c0_6] : memref<1x8xf32, #tpu.memory_space<vmem>>, vector<1x8xf32>
    %14 = arith.index_cast %c0_i32_3 : i32 to index
    %c0_7 = arith.constant 0 : index
    %15 = vector.load %arg5[%14, %c0_7] : memref<1x8xf32, #tpu.memory_space<vmem>>, vector<1x8xf32>
    %16 = vector.shape_cast %11 : vector<8x128xf32> to vector<1x8x128xf32>
    %17 = vector.broadcast %16 : vector<1x8x128xf32> to vector<2x8x128xf32>
    %18 = arith.mulf %9, %17 : vector<2x8x128xf32>
    %cst_8 = arith.constant dense<0.000000e+00> : vector<2x8xf32>
    %19 = vector.multi_reduction <add>, %18, %cst_8 [2] : vector<2x8x128xf32> to vector<2x8xf32>
    %20 = vector.broadcast %13 : vector<1x8xf32> to vector<2x8xf32>
    %21 = arith.addf %19, %20 : vector<2x8xf32>
    %22 = math.tanh %21 : vector<2x8xf32>
    %23 = vector.shape_cast %22 : vector<2x8xf32> to vector<2x8x1xf32>
    %24 = vector.broadcast %23 : vector<2x8x1xf32> to vector<2x8x128xf32>
    %25 = arith.mulf %24, %9 : vector<2x8x128xf32>
    %cst_9 = arith.constant dense<0.000000e+00> : vector<2x128xf32>
    %26 = vector.multi_reduction <add>, %25, %cst_9 [1] : vector<2x8x128xf32> to vector<2x128xf32>
    %27 = arith.addf %3, %26 : vector<2x128xf32>
    %cst_10 = arith.constant dense<0.000000e+00> : vector<2xf32>
    %28 = vector.multi_reduction <add>, %22, %cst_10 [1] : vector<2x8xf32> to vector<2xf32>
    %29 = vector.shape_cast %28 : vector<2xf32> to vector<2x1xf32>
    %30 = arith.addf %4, %29 : vector<2x1xf32>
    %31 = vector.broadcast %15 : vector<1x8xf32> to vector<2x8xf32>
    %32 = arith.mulf %22, %31 : vector<2x8xf32>
    %cst_11 = arith.constant dense<0.000000e+00> : vector<2xf32>
    %33 = vector.multi_reduction <add>, %32, %cst_11 [1] : vector<2x8xf32> to vector<2xf32>
    %34 = vector.shape_cast %33 : vector<2xf32> to vector<2x1xf32>
    %35 = arith.addf %5, %34 : vector<2x1xf32>
    %c1_i32 = arith.constant 1 : i32
    %c0_12 = arith.constant 0 : index
    %c0_13 = arith.constant 0 : index
    %36 = vector.load %arg9[%c0_12, %c0_13] : memref<2x128xf32, #tpu.memory_space<vmem>>, vector<2x128xf32>
    %37 = arith.addf %36, %27 : vector<2x128xf32>
    %c0_14 = arith.constant 0 : index
    %c0_15 = arith.constant 0 : index
    %38 = vector.load %arg9[%c0_14, %c0_15] : memref<2x128xf32, #tpu.memory_space<vmem>>, vector<2x128xf32>
    tpu.vector_store %arg9[%c0_14, %c0_15], %37 {strides = array<i32>} : memref<2x128xf32, #tpu.memory_space<vmem>>, vector<2x128xf32>,
    %c0_16 = arith.constant 0 : index
    %c0_17 = arith.constant 0 : index
    %39 = vector.load %arg10[%c0_16, %c0_17] : memref<2x1xf32, #tpu.memory_space<vmem>>, vector<2x1xf32>
    %40 = arith.addf %39, %30 : vector<2x1xf32>
    %c0_18 = arith.constant 0 : index
    %c0_19 = arith.constant 0 : index
    %41 = vector.load %arg10[%c0_18, %c0_19] : memref<2x1xf32, #tpu.memory_space<vmem>>, vector<2x1xf32>
    tpu.vector_store %arg10[%c0_18, %c0_19], %40 {strides = array<i32>} : memref<2x1xf32, #tpu.memory_space<vmem>>, vector<2x1xf32>,
    %c0_20 = arith.constant 0 : index
    %c0_21 = arith.constant 0 : index
    %42 = vector.load %arg11[%c0_20, %c0_21] : memref<2x1xf32, #tpu.memory_space<vmem>>, vector<2x1xf32>
    %43 = arith.addf %42, %35 : vector<2x1xf32>
    %c0_22 = arith.constant 0 : index
    %c0_23 = arith.constant 0 : index
    %44 = vector.load %arg11[%c0_22, %c0_23] : memref<2x1xf32, #tpu.memory_space<vmem>>, vector<2x1xf32>
    tpu.vector_store %arg11[%c0_22, %c0_23], %43 {strides = array<i32>} : memref<2x1xf32, #tpu.memory_space<vmem>>, vector<2x1xf32>,
    %c0_i32_24 = arith.constant 0 : i32
    %45 = arith.cmpi eq, %arg1, %c0_i32_24 : i32
    %46 = arith.extui %45 : i1 to i32
    %c0_i32_25 = arith.constant 0 : i32
    %47 = arith.cmpi ne, %46, %c0_i32_25 : i32
    scf.if %47 {
      %c0_26 = arith.constant 0 : index
      %c0_27 = arith.constant 0 : index
      %48 = vector.load %arg6[%c0_26, %c0_27] : memref<1x128xf32, #tpu.memory_space<vmem>>, vector<1x128xf32>
      %c0_28 = arith.constant 0 : index
      %c0_29 = arith.constant 0 : index
      %49 = vector.load %arg7[%c0_28, %c0_29] : memref<1x128xf32, #tpu.memory_space<vmem>>, vector<1x128xf32>
      %c0_30 = arith.constant 0 : index
      %c0_31 = arith.constant 0 : index
      %50 = vector.load %arg9[%c0_30, %c0_31] : memref<2x128xf32, #tpu.memory_space<vmem>>, vector<2x128xf32>
      %51 = vector.broadcast %48 : vector<1x128xf32> to vector<2x128xf32>
      %52 = arith.mulf %51, %50 : vector<2x128xf32>
      %c0_32 = arith.constant 0 : index
      %c0_33 = arith.constant 0 : index
      %53 = vector.load %arg10[%c0_32, %c0_33] : memref<2x1xf32, #tpu.memory_space<vmem>>, vector<2x1xf32>
      %54 = vector.broadcast %49 : vector<1x128xf32> to vector<2x128xf32>
      %55 = vector.broadcast %53 : vector<2x1xf32> to vector<2x128xf32>
      %56 = arith.mulf %54, %55 : vector<2x128xf32>
      %57 = arith.addf %52, %56 : vector<2x128xf32>
      %c0_34 = arith.constant 0 : index
      %c0_35 = arith.constant 0 : index
      %58 = vector.load %arg11[%c0_34, %c0_35] : memref<2x1xf32, #tpu.memory_space<vmem>>, vector<2x1xf32>
      %59 = vector.broadcast %58 : vector<2x1xf32> to vector<2x128xf32>
      %60 = arith.addf %57, %59 : vector<2x128xf32>
      %c0_36 = arith.constant 0 : index
      %c0_37 = arith.constant 0 : index
      %61 = vector.load %arg8[%c0_36, %c0_37] : memref<2x128xf32, #tpu.memory_space<vmem>>, vector<2x128xf32>
      tpu.vector_store %arg8[%c0_36, %c0_37], %60 {strides = array<i32>} : memref<2x128xf32, #tpu.memory_space<vmem>>, vector<2x128xf32>,
    } else {
    }
    return
  }
  func.func @transform_0(%arg0: i32, %arg1: i32) -> (i32, i32, i32) {
    %c0_i32 = arith.constant 0 : i32
    %c0_i32_0 = arith.constant 0 : i32
    return %arg0, %arg1, %c0_i32 : i32, i32, i32
  }
  func.func @transform_1(%arg0: i32, %arg1: i32) -> (i32, i32) {
    %c0_i32 = arith.constant 0 : i32
    %c0_i32_0 = arith.constant 0 : i32
    return %arg1, %c0_i32 : i32, i32
  }
  func.func @transform_2(%arg0: i32, %arg1: i32) -> (i32, i32) {
    %c0_i32 = arith.constant 0 : i32
    %c0_i32_0 = arith.constant 0 : i32
    return %arg1, %c0_i32 : i32, i32
  }
  func.func @transform_3(%arg0: i32, %arg1: i32) -> (i32, i32) {
    %c0_i32 = arith.constant 0 : i32
    %c0_i32_0 = arith.constant 0 : i32
    return %arg1, %c0_i32 : i32, i32
  }
  func.func @transform_4(%arg0: i32, %arg1: i32) -> (i32, i32) {
    %c0_i32 = arith.constant 0 : i32
    %c0_i32_0 = arith.constant 0 : i32
    %c0_i32_1 = arith.constant 0 : i32
    return %c0_i32, %c0_i32_0 : i32, i32
  }
  func.func @transform_5(%arg0: i32, %arg1: i32) -> (i32, i32) {
    %c0_i32 = arith.constant 0 : i32
    %c0_i32_0 = arith.constant 0 : i32
    %c0_i32_1 = arith.constant 0 : i32
    return %c0_i32, %c0_i32_0 : i32, i32
  }
  func.func @transform_6(%arg0: i32, %arg1: i32) -> (i32, i32) {
    %c0_i32 = arith.constant 0 : i32
    %c0_i32_0 = arith.constant 0 : i32
    return %arg0, %c0_i32 : i32, i32
  }
}

</mosaic_0001>

<bundles_post_ra>
// kernel: tpu_custom_call.1
= control target key start
LH: loop header
LB: loop body
LE: loop exit
PB: predicated region body
PF: predicated region fallthrough
CT: control target
= control target key end

     0   :  { %11 = vsyncpa [#allocation6], 0  ;;  %s412_s0 = inlined_call_operand.hbm [shape: f32[2,8,128], index: 0, kind: input, shape index: {}]   ;;  %s413_s1 = inlined_call_operand.hbm [shape: f32[8,128], index: 1, kind: input, shape index: {}]   ;;  %s414_s2 = inlined_call_operand.vmem [shape: f32[1,8], index: 2, kind: input, shape index: {}]   ;;  %s415_s3 = inlined_call_operand.vmem [shape: f32[1,8], index: 3, kind: input, shape index: {}]   ;;  %s416_s4 = inlined_call_operand.vmem [shape: f32[1,128], index: 4, kind: input, shape index: {}]   ;;  %s417_s5 = inlined_call_operand.vmem [shape: f32[1,128], index: 5, kind: input, shape index: {}]   ;;  %s418_s6 = inlined_call_operand.hbm [shape: f32[2,128], index: 6, kind: output, shape index: {}]  }
   0x1   :  { %12 = vsyncpa [#allocation9], 0 }
   0x2   :  { %13 = vsyncpa [#allocation7], 0  ;;  %s313_s21 = smov [#allocation5]   ;;  %s241_s25 = scalar_lea.hbm %s412_s0, 256 }
   0x3   :  { %s19_s22 = sshll.u32 %s313_s21, 4  ;;  %p242_p0 = scmp.ne.s32.totalorder %s412_s0, %s241_s25  ;;  %s20_s22 = int_to_ptr.vmem [resolvable:$true] %s19_s22 }
   0x4   :  { %p245_p1 = scmp.lt.u32.totalorder %s241_s25, %s412_s0 }
   0x6   :  { %p247_p2 = pnand %p245_p1, %p242_p0 }
   0x8   :  { %250 = shalt.err (!%p247_p2)
}
   0x9   :  { %s251_s30 = scalar_lea.vmem %s20_s22, 256  ;;  %p256_p4 = scmp.lt.s32.totalorder %s20_s22, %s20_s22 }
   0xa   :  { %p252_p3 = scmp.ne.s32.totalorder %s20_s22, %s251_s30  ;;  %p257_p5 = scmp.lt.s32.totalorder %s251_s30, %s251_s30 }
   0xc   :  { %p258_p6 = por %p257_p5, %p256_p4 }
   0xe   :  { %p259_p7 = pnand %p258_p6, %p252_p3 }
  0x10   :  { %262 = shalt.err (!%p259_p7)
}
  0x11   :  { %s314_s7 = smov 128   ;;  %s315_s8 = smov 8  }
  0x12   :  { %25 = dma.hbm_to_vmem [thread:$0]  %s412_s0, 256, %s20_s22, [#allocation6], %s314_s7, %s314_s7, %s315_s8  }
  0x13   :  { %s316_s11 = smov [#allocation8]   ;;  %s263_s15 = scalar_lea.hbm %s413_s1, 128 }
  0x14   :  { %s32_s12 = sshll.u32 %s316_s11, 4  ;;  %p264_p8 = scmp.ne.s32.totalorder %s413_s1, %s263_s15  ;;  %s33_s12 = int_to_ptr.vmem [resolvable:$true] %s32_s12 }
  0x15   :  { %p267_p9 = scmp.lt.u32.totalorder %s263_s15, %s413_s1 }
  0x17   :  { %p269_p10 = pnand %p267_p9, %p264_p8 }
  0x19   :  { %272 = shalt.err (!%p269_p10)
}
  0x1a   :  { %s273_s20 = scalar_lea.vmem %s33_s12, 128  ;;  %p278_p12 = scmp.lt.s32.totalorder %s33_s12, %s33_s12 }
  0x1b   :  { %p274_p11 = scmp.ne.s32.totalorder %s33_s12, %s273_s20  ;;  %p279_p13 = scmp.lt.s32.totalorder %s273_s20, %s273_s20 }
  0x1d   :  { %p280_p0 = por %p279_p13, %p278_p12 }
  0x1f   :  { %p281_p1 = pnand %p280_p0, %p274_p11 }
  0x21   :  { %284 = shalt.err (!%p281_p1)
}
  0x22   :  { %35 = dma.hbm_to_vmem [thread:$0]  %s413_s1, 128, %s33_s12, [#allocation9]  }
  0x23   :  { %307 = dma.done.wait [#allocation6], 256  }
  0x24   :  { %308 = vsyncadd [#allocation6], 4294967040 }
  0x25   :  { %309 = dma.done.wait [#allocation9], 128  }
  0x26   :  { %310 = vsyncadd [#allocation9], 4294967168  ;;  %v58_v0 = vld [vmem:[#allocation5] sm:$0xff]  ;;  %v60_v1 = vld [vmem:[#allocation8] sm:$0xff]  ;;  %v317_v7 = vmov 0   ;;  %v318_v18 = vmov 0.0   ;;  %v108_v19 = vlaneseq }
  0x27   :  { %v59_v2 = vld [vmem:[#allocation5 + $0x8] sm:$0xff]  ;;  %v63_v3 = vmul.f32 %v60_v1, %v58_v0  ;;  %v224_v4 = vld [vmem:[%s414_s2] ss:$0 sm:$0xff]  ;;  %235 = vset.pattern.permute.xlu0 %v317_v7  ;;  %236 = vset.pattern.permute.xlu1 %v317_v7  ;;  %54 = vst [vmem:[#allocation2] sm:$0x3] %v318_v18  ;;  %vm55_vm0 = vcmask 1024  }
  0x28   :  { %75 = vbcast.lane.b32.xlu1 %v224_v4, 256  ;;  %v64_v5 = vmul.f32 %v60_v1, %v59_v2  ;;  %v225_v6 = vld [vmem:[%s415_s3] ss:$0 sm:$0xff]  ;;  %56 = vst.msk [vmem:[#allocation3] sm:$0x3] %vm55_vm0, %v318_v18  ;;  %v109_v20 = vand.u32 127, %v108_v19 }
  0x29   :  { %65 = vadd.xlane.f32.xlu0 %v63_v3  ;;  %57 = vst.msk [vmem:[#allocation4] sm:$0x3] %vm55_vm0, %v318_v18  ;;  %v111_v21 = vshrl.u32 %v108_v19, 7  ;;  %vm118_vm1 = vcmask 1041409   ;;  %vm121_vm2 = vcmask 58368   ;;  %s319_s27 = smov [#allocation10]  }
  0x2a   :  { %v227_v60 = vld [vmem:[%s417_s5] ss:$0 sm:$0xff]  ;;  %s214_s28 = sshll.u32 %s319_s27, 4  ;;  %s215_s28 = int_to_ptr.vmem [resolvable:$true] %s214_s28 }
  0x2b   :  { %v112_v23 = vsub.s32 %v109_v20, %v111_v21  ;;  %v226_v62 = vld [vmem:[%s416_s4] ss:$0 sm:$0xff]  ;;  %s285_s29 = scalar_lea.vmem %s215_s28, 32  ;;  %p290_p3 = scmp.lt.s32.totalorder %s215_s28, %s215_s28 }
  0x2c   :  { %132 = vbcast.lane.b32.xlu1 %v225_v6, 256  ;;  %p286_p2 = scmp.ne.s32.totalorder %s215_s28, %s285_s29  ;;  %p291_p4 = scmp.lt.s32.totalorder %s285_s29, %s285_s29 }
  0x2d   :  { %67 = vadd.xlane.f32.xlu0 %v64_v5 }
  0x2e   :  { %v159_v49 = vld [vmem:[#allocation2] sm:$0x3]  ;;  %p292_p5 = por %p291_p4, %p290_p3 }
  0x2f   :  { %v166_v52 = vld [vmem:[#allocation3] sm:$0x3] }
  0x30   :  { %v170_v55 = vld [vmem:[#allocation4] sm:$0x3]  ;;  %p293_p6 = pnand %p292_p5, %p286_p2 }
  0x9a   :  { %v76_v8 = vpop.permute.xlu1 %75 }
  0x9e   :  { %v133_v15 = vpop.permute.xlu1 %132 }
  0xb6   :  { %v66_v9 = vpop.xlane.xlu0 %65 }
  0xb7   :  { %v78_v10 = vadd.f32 %v76_v8, %v66_v9 }
  0xb9   :  { %237 = vtanh.f32 %v78_v10 }
  0xba   :  { %v68_v11 = vpop.xlane.xlu0 %67 }
  0xbb   :  { %v79_v12 = vadd.f32 %v76_v8, %v68_v11 }
  0xbd   :  { %239 = vtanh.f32 %v79_v12 }
  0xc3   :  { %v238_v13 = vpop.eup %237 }
  0xc4   :  { %84 = vperm.xlu0 %235, %v238_v13   ;;  %v135_v16 = vmul.f32 %v238_v13, %v133_v15 }
  0xc7   :  { %v240_v14 = vpop.eup %239 }
  0xc8   :  { %89 = vperm.xlu1 %236, %v240_v14   ;;  %v136_v17 = vmul.f32 %v240_v14, %v133_v15 }
  0xcc   :  { %140 = vperm.xlu1 %236, %v135_v16  }
  0xd0   :  { %143 = vperm.xlu1 %236, %v136_v17  }
 0x143   :  { %v85_v22 = vpop.permute.xlu0 %84 }
 0x144   :  { %v92_v24 = vmul.f32 %v85_v22, %v58_v0  ;;  %v113_v28 = vrot.slane %v85_v22, %v112_v23 }
 0x146   :  { %v94_v25 = vrot.slane %v92_v24, 4 }
 0x147   :  { %v90_v26 = vpop.permute.xlu1 %89 }
 0x148   :  { %v95_v27 = vadd.f32 %v94_v25, %v92_v24  ;;  %v93_v29 = vmul.f32 %v90_v26, %v59_v2  ;;  %v117_v30 = vrot.slane %v90_v26, %v112_v23 }
 0x14a   :  { %v96_v31 = vrot.slane %v95_v27, 2  ;;  %v100_v32 = vrot.slane %v93_v29, 4  ;;  %v119_v33 = vsel %vm118_vm1, %v117_v30, %v113_v28 }
 0x14b   :  { %v141_v34 = vpop.permute.xlu1 %140  ;;  %v122_v35 = vsel %vm121_vm2, %v119_v33, 0.0 }
 0x14c   :  { %v97_v36 = vadd.f32 %v96_v31, %v95_v27  ;;  %v101_v37 = vadd.f32 %v100_v32, %v93_v29  ;;  %123 = vadd.xlane.f32.xlu1 %v122_v35  ;;  %v148_v42 = vrot.slane %v141_v34, %v112_v23 }
 0x14e   :  { %v102_v38 = vrot.slane %v101_v37, 2  ;;  %v98_v40 = vrot.slane %v97_v36, 1 }
 0x14f   :  { %v144_v39 = vpop.permute.xlu1 %143 }
 0x150   :  { %v103_v41 = vadd.f32 %v102_v38, %v101_v37  ;;  %v152_v43 = vrot.slane %v144_v39, %v112_v23  ;;  %v99_v47 = vadd.f32 %v98_v40, %v97_v36 }
 0x152   :  { %v104_v44 = vrot.slane %v103_v41, 1  ;;  %v153_v45 = vsel %vm118_vm1, %v152_v43, %v148_v42 }
 0x153   :  { %v155_v46 = vsel %vm121_vm2, %v153_v45, 0.0 }
 0x154   :  { %v105_v48 = vadd.f32 %v104_v44, %v103_v41  ;;  %156 = vadd.xlane.f32.xlu0 %v155_v46 }
 0x156   :  { %v162_v50 = vsel %vm118_vm1, %v105_v48, %v99_v47 }
 0x157   :  { %v164_v51 = vadd.f32 %v162_v50, %v159_v49 }
 0x159   :  { %165 = vst [vmem:[#allocation2] sm:$0x3] %v164_v51 }
 0x160   :  { %v178_v63 = vld [vmem:[#allocation2] sm:$0x3] }
 0x161   :  { %v185_v1 = vmul.f32 %v226_v62, %v178_v63 }
 0x1d9   :  { %v124_v53 = vpop.xlane.xlu1 %123 }
 0x1da   :  { %v167_v54 = vadd.f32 %v166_v52, %v124_v53 }
 0x1dc   :  { %169 = vst.msk [vmem:[#allocation3] sm:$0x3] %vm55_vm0, %v167_v54 }
 0x1e1   :  { %v157_v56 = vpop.xlane.xlu0 %156 }
 0x1e2   :  { %v171_v57 = vadd.f32 %v170_v55, %v157_v56 }
 0x1e3   :  { %v186_v58 = vld [vmem:[#allocation3] sm:$0x3] }
 0x1e4   :  { %172 = vst.msk [vmem:[#allocation4] sm:$0x3] %vm55_vm0, %v171_v57  ;;  %195 = vperm.xlu1 %236, %v186_v58  }
 0x1eb   :  { %v200_v59 = vld [vmem:[#allocation4] sm:$0x3] }
 0x1ec   :  { %203 = vperm.xlu1 %236, %v200_v59  }
 0x263   :  { %v196_v61 = vpop.permute.xlu1 %195 }
 0x264   :  { %v198_v0 = vmul.f32 %v227_v60, %v196_v61 }
 0x266   :  { %v199_v2 = vadd.f32 %v198_v0, %v185_v1 }
 0x26b   :  { %v204_v3 = vpop.permute.xlu1 %203 }
 0x26c   :  { %v206_v4 = vadd.f32 %v204_v3, %v199_v2 }
 0x26e   :  { %207 = vst [vmem:[#allocation10] sm:$0x3] %v206_v4 }
 0x26f   :  { %296 = shalt.err (!%p293_p6)
}
 0x270   :  { %s297_s4 = scalar_lea.hbm %s418_s6, 32 }
 0x271   :  { %p298_p7 = scmp.ne.s32.totalorder %s418_s6, %s297_s4  ;;  %p301_p8 = scmp.lt.u32.totalorder %s297_s4, %s418_s6 }
 0x273   :  { %p303_p9 = pnand %p301_p8, %p298_p7 }
 0x275   :  { %306 = shalt.err (!%p303_p9)
}
 0x276   :  { %217 = dma.vmem_to_hbm [thread:$0]  %s215_s28, 32, %s418_s6, [#allocation7]  }
 0x277   :  { %311 = dma.done.wait [#allocation7], 32  }
 0x278   :  { %312 = vsyncadd [#allocation7], 4294967264 }
 0x279   :  { %221 = vsyncpa [#allocation6], 1 }
 0x27a   :  { %222 = vsyncpa [#allocation9], 1 }
 0x27b   :  { %223 = vsyncpa [#allocation7], 1 }

</bundles_post_ra>
